<compile_context>
chip_gen: v5e
topology: v5e:2x2
jax: 0.10.0
libtpu: 0.0.40
codegen_flags: <defaults>
</compile_context>

<pallas_src>
import functools

import jax
import jax.numpy as jnp
from jax.experimental import pallas as pl
from jax.experimental.pallas import tpu as pltpu


def _backproject_kernel(invk_ref, depth_ref, out_ref, *, row_tile, width):
    # invk_ref : (1, 3, 3)        SMEM — per-batch inverse intrinsics (3x3)
    # depth_ref: (1, 1, TH, W)    VMEM — tile of depth rows
    # out_ref  : (1, 4, TH, W)    VMEM — tile of output cam_points
    d = depth_ref[0, 0]                                      # (TH, W) f32

    # Pixel coords synthesized in-kernel: x from lane iota, y from the row-tile
    # offset + sublane iota.  No division, no HBM traffic for the constant.
    x = jax.lax.broadcasted_iota(jnp.int32, (row_tile, width), 1).astype(
        jnp.float32)
    y = (pl.program_id(1) * row_tile
         + jax.lax.broadcasted_iota(jnp.int32, (row_tile, width), 0)).astype(
        jnp.float32)

    # 9 scalar reads from SMEM -> scalar * vector broadcasts (pure VPU work).
    k00 = invk_ref[0, 0, 0]; k01 = invk_ref[0, 0, 1]; k02 = invk_ref[0, 0, 2]
    k10 = invk_ref[0, 1, 0]; k11 = invk_ref[0, 1, 1]; k12 = invk_ref[0, 1, 2]
    k20 = invk_ref[0, 2, 0]; k21 = invk_ref[0, 2, 1]; k22 = invk_ref[0, 2, 2]

    # Four dense full-sublane per-channel stores (no concatenate / XLU shuffle).
    out_ref[0, 0] = (k00 * x + k01 * y + k02) * d
    out_ref[0, 1] = (k10 * x + k11 * y + k12) * d
    out_ref[0, 2] = (k20 * x + k21 * y + k22) * d
    out_ref[0, 3] = jnp.ones_like(d)


def _pick_row_tile(batch_size, height, width, target_out_bytes):
    """Pick TH: multiple-of-8 divisor of H, output block <= target, >=2 steps."""
    # One (1, 4, TH, W) f32 output block is 16 * TH * W bytes.
    th_budget = max(1, target_out_bytes // (16 * width))

    best = None
    for th in range(8, height + 1, 8):
        if height % th == 0 and th <= th_budget:
            best = th
    if best is None:
        # No multiple-of-8 divisor fits the budget: take the smallest one.
        for th in range(8, height + 1, 8):
            if height % th == 0:
                best = th
                break
    if best is None:
        # No multiple-of-8 divisor at all: full height (block dim == array dim
        # is always legal).
        best = height

    # v7x has 2 TensorCores: make sure the parallel grid has >= 2 steps.
    if batch_size * (height // best) < 2:
        for th in range(best - 8, 7, -8):
            if height % th == 0:
                best = th
                break
    return best


def make_backproject_depth(batch_size, height, width,
                           target_out_block_bytes=2 << 20):
    """Returns (pix_coords, forward_fn) mirroring BackprojectDepth.

    pix_coords mirrors the module's constant buffer (shape (B, 3, H*W)); it is
    NOT consumed by the kernel (coords are synthesized in-kernel) and is
    returned only to mirror the PyTorch module / for reference tests.
    """
    hw = height * width
    row_tile = _pick_row_tile(batch_size, height, width, target_out_block_bytes)
    grid = (batch_size, height // row_tile)

    # Constant buffer, built once in plain JAX (reference / parity only).
    xs = jnp.arange(width, dtype=jnp.float32)
    ys = jnp.arange(height, dtype=jnp.float32)
    grid_x, grid_y = jnp.meshgrid(xs, ys, indexing="xy")             # (H, W)
    pix_coords = jnp.stack([grid_x.reshape(-1),
                            grid_y.reshape(-1),
                            jnp.ones((hw,), jnp.float32)], axis=0)    # (3, HW)
    pix_coords = jnp.broadcast_to(pix_coords, (batch_size, 3, hw))

    # VMEM budget: double-buffered depth + output blocks, plus headroom.
    out_block_bytes = 4 * row_tile * width * 4
    depth_block_bytes = row_tile * width * 4
    needed = 2 * (out_block_bytes + depth_block_bytes)
    vmem_limit_bytes = int(min(100 << 20, max(2 * needed + (1 << 20), 16 << 20)))

    cost = pl.CostEstimate(
        flops=10 * batch_size * hw,
        transcendentals=0,
        bytes_accessed=20 * batch_size * hw)   # 4 B read + 16 B written / elem

    kernel = pl.pallas_call(
        functools.partial(_backproject_kernel, row_tile=row_tile, width=width),
        out_shape=jax.ShapeDtypeStruct((batch_size, 4, height, width),
                                       jnp.float32),
        grid_spec=pltpu.PrefetchScalarGridSpec(
            num_scalar_prefetch=0,
            grid=grid,
            in_specs=[
                # inv_K 3x3 per batch, held as scalars in SMEM.
                pl.BlockSpec((1, 3, 3), lambda b, t: (b, 0, 0),
                             memory_space=pltpu.MemorySpace.SMEM),
                # depth tile: TH image rows, full width (dense (TH, W) slab).
                pl.BlockSpec((1, 1, row_tile, width),
                             lambda b, t: (b, 0, t, 0)),
            ],
            out_specs=pl.BlockSpec((1, 4, row_tile, width),
                                   lambda b, t: (b, 0, t, 0)),
        ),
        compiler_params=pltpu.CompilerParams(
            dimension_semantics=("parallel", "parallel"),
            vmem_limit_bytes=vmem_limit_bytes),
        cost_estimate=cost,
    )

    def forward(depth, inv_K):
        # depth: (B, 1, H, W) NCHW; inv_K: (B, 4, 4)
        depth_f32 = depth.reshape(batch_size, 1, height, width).astype(
            jnp.float32)
        invk_33 = inv_K[:, :3, :3].astype(jnp.float32)                # (B, 3, 3)
        cam = kernel(invk_33, depth_f32)                              # (B,4,H,W)
        return cam.reshape(batch_size, 4, hw)                         # (B,4,HW)

    return pix_coords, forward


def _reference(depth, inv_K, pix_coords, batch_size, hw):
    cam = jnp.einsum("bij,bjn->bin", inv_K[:, :3, :3].astype(jnp.float32),
                     pix_coords)
    cam = depth.reshape(batch_size, 1, hw).astype(jnp.float32) * cam
    ones = jnp.ones((batch_size, 1, hw), jnp.float32)
    return jnp.concatenate([cam, ones], axis=1)


if __name__ == "__main__":
    key = jax.random.PRNGKey(0)
    k_depth, k_invk = jax.random.split(key)

    # --- test 1: single row-tile per image (TH == H), B gives 2 grid steps --
    B, H, W = 2, 16, 16
    HW = H * W
    depth = jax.random.uniform(k_depth, (B, 1, H, W), jnp.float32,
                               minval=0.1, maxval=10.0)
    inv_K = jax.random.normal(k_invk, (B, 4, 4), jnp.float32)

    pix_coords, forward = make_backproject_depth(B, H, W)
    out = jax.block_until_ready(forward(depth, inv_K))
    ref = _reference(depth, inv_K, pix_coords, B, HW)
    assert out.shape == (B, 4, HW), out.shape
    assert jnp.allclose(out, ref, atol=1e-4, rtol=1e-5), "mismatch (test 1)"

    # --- test 2: multi row-tile path (exercise program_id row offset) -------
    B2, H2, W2 = 2, 16, 32
    HW2 = H2 * W2
    depth2 = jax.random.uniform(k_depth, (B2, 1, H2, W2), jnp.float32,
                                minval=0.1, maxval=10.0)
    inv_K2 = jax.random.normal(k_invk, (B2, 4, 4), jnp.float32)
    # Tiny block budget -> TH = 8 -> 2 row tiles per image.
    pix2, forward2 = make_backproject_depth(B2, H2, W2,
                                            target_out_block_bytes=8 * W2 * 16)
    out2 = jax.block_until_ready(forward2(depth2, inv_K2))
    ref2 = _reference(depth2, inv_K2, pix2, B2, HW2)
    assert out2.shape == (B2, 4, HW2), out2.shape
    assert jnp.allclose(out2, ref2, atol=1e-4, rtol=1e-5), "mismatch (test 2)"

    # --- test 3: B == 1 -> row tile shrunk so the grid still has >= 2 steps -
    B3, H3, W3 = 1, 24, 16
    HW3 = H3 * W3
    depth3 = jax.random.uniform(k_depth, (B3, 1, H3, W3), jnp.float32,
                                minval=0.1, maxval=10.0)
    inv_K3 = jax.random.normal(k_invk, (B3, 4, 4), jnp.float32)
    pix3, forward3 = make_backproject_depth(B3, H3, W3)
    out3 = jax.block_until_ready(forward3(depth3, inv_K3))
    ref3 = _reference(depth3, inv_K3, pix3, B3, HW3)
    assert out3.shape == (B3, 4, HW3), out3.shape
    assert jnp.allclose(out3, ref3, atol=1e-4, rtol=1e-5), "mismatch (test 3)"

    print("KERNEL_OK")
</pallas_src>

<mosaic_0001>
module attributes {stable_mosaic.version = 11 : i64} {
  func.func @_backproject_kernel(%arg0: i32, %arg1: i32, %arg2: memref<1x3x3xf32, #tpu.memory_space<smem>>, %arg3: memref<1x1x16x16xf32, #tpu.memory_space<vmem>>, %arg4: memref<1x4x16x16xf32, #tpu.memory_space<vmem>>) attributes {dimension_semantics = [#tpu.dimension_semantics<parallel>, #tpu.dimension_semantics<parallel>], iteration_bounds = array<i64: 2, 1>, scalar_prefetch = 0 : i64, scratch_operands = 0 : i64, tpu.core_type = #tpu.core_type<tc>, window_params = [{transform_indices = @transform_0, window_bounds = array<i64: 1, 3, 3>}, {transform_indices = @transform_1, window_bounds = array<i64: 1, 1, 16, 16>}, {transform_indices = @transform_2, window_bounds = array<i64: 1, 4, 16, 16>}]} {
    %c0 = arith.constant 0 : index
    %c0_0 = arith.constant 0 : index
    %c0_1 = arith.constant 0 : index
    %c0_2 = arith.constant 0 : index
    %0 = vector.load %arg3[%c0, %c0_0, %c0_1, %c0_2] : memref<1x1x16x16xf32, #tpu.memory_space<vmem>>, vector<1x1x16x16xf32>
    %1 = vector.shape_cast %0 : vector<1x1x16x16xf32> to vector<16x16xf32>
    %2 = tpu.iota {dimensions = array<i32: 1>} : vector<16x16xi32>
    %3 = arith.sitofp %2 : vector<16x16xi32> to vector<16x16xf32>
    %c16_i32 = arith.constant 16 : i32
    %4 = arith.muli %arg1, %c16_i32 : i32
    %5 = tpu.iota {dimensions = array<i32: 0>} : vector<16x16xi32>
    %6 = vector.broadcast %4 : i32 to vector<16x16xi32>
    %7 = arith.addi %6, %5 : vector<16x16xi32>
    %8 = arith.sitofp %7 : vector<16x16xi32> to vector<16x16xf32>
    %c0_3 = arith.constant 0 : index
    %c0_4 = arith.constant 0 : index
    %c0_5 = arith.constant 0 : index
    %9 = memref.load %arg2[%c0_3, %c0_4, %c0_5] : memref<1x3x3xf32, #tpu.memory_space<smem>>
    %c0_6 = arith.constant 0 : index
    %c0_7 = arith.constant 0 : index
    %c1 = arith.constant 1 : index
    %10 = memref.load %arg2[%c0_6, %c0_7, %c1] : memref<1x3x3xf32, #tpu.memory_space<smem>>
    %c0_8 = arith.constant 0 : index
    %c0_9 = arith.constant 0 : index
    %c2 = arith.constant 2 : index
    %11 = memref.load %arg2[%c0_8, %c0_9, %c2] : memref<1x3x3xf32, #tpu.memory_space<smem>>
    %c0_10 = arith.constant 0 : index
    %c1_11 = arith.constant 1 : index
    %c0_12 = arith.constant 0 : index
    %12 = memref.load %arg2[%c0_10, %c1_11, %c0_12] : memref<1x3x3xf32, #tpu.memory_space<smem>>
    %c0_13 = arith.constant 0 : index
    %c1_14 = arith.constant 1 : index
    %c1_15 = arith.constant 1 : index
    %13 = memref.load %arg2[%c0_13, %c1_14, %c1_15] : memref<1x3x3xf32, #tpu.memory_space<smem>>
    %c0_16 = arith.constant 0 : index
    %c1_17 = arith.constant 1 : index
    %c2_18 = arith.constant 2 : index
    %14 = memref.load %arg2[%c0_16, %c1_17, %c2_18] : memref<1x3x3xf32, #tpu.memory_space<smem>>
    %c0_19 = arith.constant 0 : index
    %c2_20 = arith.constant 2 : index
    %c0_21 = arith.constant 0 : index
    %15 = memref.load %arg2[%c0_19, %c2_20, %c0_21] : memref<1x3x3xf32, #tpu.memory_space<smem>>
    %c0_22 = arith.constant 0 : index
    %c2_23 = arith.constant 2 : index
    %c1_24 = arith.constant 1 : index
    %16 = memref.load %arg2[%c0_22, %c2_23, %c1_24] : memref<1x3x3xf32, #tpu.memory_space<smem>>
    %c0_25 = arith.constant 0 : index
    %c2_26 = arith.constant 2 : index
    %c2_27 = arith.constant 2 : index
    %17 = memref.load %arg2[%c0_25, %c2_26, %c2_27] : memref<1x3x3xf32, #tpu.memory_space<smem>>
    %18 = vector.broadcast %9 : f32 to vector<16x16xf32>
    %19 = arith.mulf %18, %3 : vector<16x16xf32>
    %20 = vector.broadcast %10 : f32 to vector<16x16xf32>
    %21 = arith.mulf %20, %8 : vector<16x16xf32>
    %22 = arith.addf %19, %21 : vector<16x16xf32>
    %23 = vector.broadcast %11 : f32 to vector<16x16xf32>
    %24 = arith.addf %22, %23 : vector<16x16xf32>
    %25 = arith.mulf %24, %1 : vector<16x16xf32>
    %c0_28 = arith.constant 0 : index
    %c0_29 = arith.constant 0 : index
    %c0_30 = arith.constant 0 : index
    %c0_31 = arith.constant 0 : index
    %26 = vector.load %arg4[%c0_28, %c0_29, %c0_30, %c0_31] : memref<1x4x16x16xf32, #tpu.memory_space<vmem>>, vector<1x1x16x16xf32>
    %27 = vector.shape_cast %26 : vector<1x1x16x16xf32> to vector<16x16xf32>
    %28 = vector.shape_cast %25 : vector<16x16xf32> to vector<1x1x16x16xf32>
    tpu.vector_store %arg4[%c0_28, %c0_29, %c0_30, %c0_31], %28 {strides = array<i32>} : memref<1x4x16x16xf32, #tpu.memory_space<vmem>>, vector<1x1x16x16xf32>,
    %29 = vector.broadcast %12 : f32 to vector<16x16xf32>
    %30 = arith.mulf %29, %3 : vector<16x16xf32>
    %31 = vector.broadcast %13 : f32 to vector<16x16xf32>
    %32 = arith.mulf %31, %8 : vector<16x16xf32>
    %33 = arith.addf %30, %32 : vector<16x16xf32>
    %34 = vector.broadcast %14 : f32 to vector<16x16xf32>
    %35 = arith.addf %33, %34 : vector<16x16xf32>
    %36 = arith.mulf %35, %1 : vector<16x16xf32>
    %c0_32 = arith.constant 0 : index
    %c1_33 = arith.constant 1 : index
    %c0_34 = arith.constant 0 : index
    %c0_35 = arith.constant 0 : index
    %37 = vector.load %arg4[%c0_32, %c1_33, %c0_34, %c0_35] : memref<1x4x16x16xf32, #tpu.memory_space<vmem>>, vector<1x1x16x16xf32>
    %38 = vector.shape_cast %37 : vector<1x1x16x16xf32> to vector<16x16xf32>
    %39 = vector.shape_cast %36 : vector<16x16xf32> to vector<1x1x16x16xf32>
    tpu.vector_store %arg4[%c0_32, %c1_33, %c0_34, %c0_35], %39 {strides = array<i32>} : memref<1x4x16x16xf32, #tpu.memory_space<vmem>>, vector<1x1x16x16xf32>,
    %40 = vector.broadcast %15 : f32 to vector<16x16xf32>
    %41 = arith.mulf %40, %3 : vector<16x16xf32>
    %42 = vector.broadcast %16 : f32 to vector<16x16xf32>
    %43 = arith.mulf %42, %8 : vector<16x16xf32>
    %44 = arith.addf %41, %43 : vector<16x16xf32>
    %45 = vector.broadcast %17 : f32 to vector<16x16xf32>
    %46 = arith.addf %44, %45 : vector<16x16xf32>
    %47 = arith.mulf %46, %1 : vector<16x16xf32>
    %c0_36 = arith.constant 0 : index
    %c2_37 = arith.constant 2 : index
    %c0_38 = arith.constant 0 : index
    %c0_39 = arith.constant 0 : index
    %48 = vector.load %arg4[%c0_36, %c2_37, %c0_38, %c0_39] : memref<1x4x16x16xf32, #tpu.memory_space<vmem>>, vector<1x1x16x16xf32>
    %49 = vector.shape_cast %48 : vector<1x1x16x16xf32> to vector<16x16xf32>
    %50 = vector.shape_cast %47 : vector<16x16xf32> to vector<1x1x16x16xf32>
    tpu.vector_store %arg4[%c0_36, %c2_37, %c0_38, %c0_39], %50 {strides = array<i32>} : memref<1x4x16x16xf32, #tpu.memory_space<vmem>>, vector<1x1x16x16xf32>,
    %cst = arith.constant 1.000000e+00 : f32
    %51 = vector.broadcast %cst : f32 to vector<16x16xf32>
    %c0_40 = arith.constant 0 : index
    %c3 = arith.constant 3 : index
    %c0_41 = arith.constant 0 : index
    %c0_42 = arith.constant 0 : index
    %52 = vector.load %arg4[%c0_40, %c3, %c0_41, %c0_42] : memref<1x4x16x16xf32, #tpu.memory_space<vmem>>, vector<1x1x16x16xf32>
    %53 = vector.shape_cast %52 : vector<1x1x16x16xf32> to vector<16x16xf32>
    %54 = vector.shape_cast %51 : vector<16x16xf32> to vector<1x1x16x16xf32>
    tpu.vector_store %arg4[%c0_40, %c3, %c0_41, %c0_42], %54 {strides = array<i32>} : memref<1x4x16x16xf32, #tpu.memory_space<vmem>>, vector<1x1x16x16xf32>,
    return
  }
  func.func @transform_0(%arg0: i32, %arg1: i32) -> (i32, i32, i32) {
    %c0_i32 = arith.constant 0 : i32
    %c0_i32_0 = arith.constant 0 : i32
    %c0_i32_1 = arith.constant 0 : i32
    return %arg0, %c0_i32, %c0_i32_0 : i32, i32, i32
  }
  func.func @transform_1(%arg0: i32, %arg1: i32) -> (i32, i32, i32, i32) {
    %c0_i32 = arith.constant 0 : i32
    %c0_i32_0 = arith.constant 0 : i32
    %c0_i32_1 = arith.constant 0 : i32
    return %arg0, %c0_i32, %arg1, %c0_i32_0 : i32, i32, i32, i32
  }
  func.func @transform_2(%arg0: i32, %arg1: i32) -> (i32, i32, i32, i32) {
    %c0_i32 = arith.constant 0 : i32
    %c0_i32_0 = arith.constant 0 : i32
    %c0_i32_1 = arith.constant 0 : i32
    return %arg0, %c0_i32, %arg1, %c0_i32_0 : i32, i32, i32, i32
  }
}

</mosaic_0001>

<bundles_post_ra>
// kernel: tpu_custom_call.1
= control target key start
LH: loop header
LB: loop body
LE: loop exit
PB: predicated region body
PF: predicated region fallthrough
CT: control target
= control target key end

     0   :  { %7 = vsyncpa [#allocation5], 0  ;;  %s877_s0 = inlined_call_operand.vmem [shape: f32[2,3,3], index: 0, kind: input, shape index: {}]   ;;  %s878_s1 = inlined_call_operand.hbm [shape: f32[2,1,16,16], index: 1, kind: input, shape index: {}]   ;;  %s879_s2 = inlined_call_operand.hbm [shape: f32[2,4,16,16], index: 2, kind: output, shape index: {}]  }
   0x1   :  { %9 = vsyncpa [#allocation5 + $0x1], 0 }
   0x2   :  { %10 = vsyncpa [#allocation3], 0 }
   0x3   :  { %12 = vsyncpa [#allocation3 + $0x1], 0 }
   0x4   :  { %13 = vsyncpa [#allocation4], 0 }
   0x5   :  { %15 = vsyncpa [#allocation4 + $0x1], 0  ;;  %s687_s9 = smov 0   ;;  %s689_s10 = smov 0  }
   0x6   :  { %s691_s11 = smov 0   ;;  %s693_s12 = smov 0  }
   0x7   :  { %s695_s13 = smov 0   ;;  %s697_s14 = smov 0  }
   0x8 LB: > { %s421_s15 = sadd.s32 4294967295, %s658_s14   ;;  %s422_s16 = sadd.s32 4294967294, %s658_s14   ;;  %s658_s14 = sphi %s697_s14, %s21_s14   ;;  %s654_s13 = sphi %s695_s13, %s889_s13   ;;  %s650_s12 = sphi %s693_s12, %s888_s12   ;;  %s646_s11 = sphi %s691_s11, %s887_s11   ;;  %s642_s10 = sphi %s689_s10, %s886_s10   ;;  %s638_s9 = sphi %s687_s9, %s885_s9  }
   0x9   : > { %s33_s17 = sadd.s32 1, %s654_s13  ;;  %s40_s18 = sadd.s32 1, %s646_s11 }
   0xa   : > { %p35_p0 = scmp.ge.s32.totalorder %s33_s17, 2  ;;  %p47_p1 = scmp.ne.s32.totalorder %s646_s11, %s642_s10 }
   0xb   : > { %p48_p2 = scmp.eq.s32.totalorder %s658_s14, 0  ;;  %p53_p3 = scmp.ne.s32.totalorder %s642_s10, %s638_s9 }
   0xc   : > { %s891_s17 = smov (%p35_p0, %s33_s17), 0  ;;  %p54_p5 = scmp.eq.s32.totalorder %s421_s15, 0 }
   0xd   : > { %p728_p4 = por %p48_p2, %p47_p1  ;;  %s37_s20 = ssub.s32 %s654_s13, %s891_s17 }
   0xe   : > { %p107_p6 = scmp.eq.s32.totalorder %s421_s15, 1  ;;  %p38_p7 = scmp.eq.s32.totalorder %s37_s20, 0 }
   0xf   : > { %p734_p8 = por %p54_p5, %p53_p3  ;;  %p113_p10 = scmp.eq.s32.totalorder %s422_s16, 1 }
  0x10   : > { %p738_p9 = por %p107_p6, %p47_p1  ;;  %p424_p12 = scmp.ge.s32.totalorder %s658_s14, 2 }
  0x11   : > { %s743_s23 = scalar_select %p38_p7, %s646_s11, %s40_s18  }
  0x12   : > { %p745_p11 = por %p113_p10, %p53_p3  ;;  %p465_p13 = scmp.lt.s32.totalorder %s658_s14, 2 }
  0x13   : > { %s752_s25 = sand.u32 1, %s646_s11   ;;  %s426_s27 = sshll.u32 %s654_s13, 2 }
  0x14   : > { %s425_s26 = sshll.u32 %s752_s25, 9  ;;  %s141_s30 = scalar_lea.vmem %s877_s0, %s426_s27 }
  0x15   : > { %p761_p0 = pnand %p465_p13, %p728_p4  ;;  %s143_s4 = sshll.u32 %s141_s30, 4  ;;  %s144_s4 = int_to_ptr.vmem [resolvable:$true] %s143_s4 }
  0x16   : > { %p430_p1 = scmp.ge.s32.totalorder %s658_s14, 1  ;;  %s137_s5 = scalar_lea.smem [#allocation2], %s425_s26 }
  0x17   : > { %s134_s6 = scalar_lea.sflag [#allocation5], %s752_s25  ;;  %p172_p2 = scmp.lt.s32.totalorder %s658_s14, 3 }
  0x18   : > { %457 = dma.vmem_to_smem (!%p761_p0), %s144_s4, 64, %s137_s5, %s134_s6  }
  0x19   : > { %s427_s7 = sshll.u32 %s752_s25, 4  ;;  %s446_s8 = sshll.u32 %s654_s13, 4 }
  0x1a   : > { %p173_p3 = pnand %p430_p1, %p172_p2  ;;  %s161_s18 = scalar_lea.hbm %s878_s1, %s446_s8 }
  0x1b   : > { %s154_s19 = scalar_lea.vmem [#allocation6], %s427_s7  ;;  %s162_s27 = sshll.u32 %s161_s18, 4  ;;  %s163_s27 = int_to_ptr.hbm [resolvable:$true] %s162_s27 }
  0x1c   : > { %s164_s20 = sshll.u32 %s154_s19, 4  ;;  %s151_s28 = scalar_lea.sflag [#allocation3], %s752_s25  ;;  %s165_s20 = int_to_ptr.vmem [resolvable:$true] %s164_s20 }
  0x1d   : > { %s660_s29 = smov 128   ;;  %s661_s26 = smov 8  }
  0x1e   : > { %460 = dma.hbm_to_vmem [thread:$0]  (!%p761_p0), %s163_s27, 256, %s165_s20, %s151_s28, %s660_s29, %s660_s29, %s661_s26  }
  0x1f   : > { %176 = sbr.rel (%p173_p3) target bundleno = 70 (0x46), region = 28  ;;  %s779_s30 = sand.u32 (!%p173_p3), 1, %s642_s10  }
  0x20   : > { %s431_s4 = sshll.u32 (!%p173_p3), %s779_s30, 9  ;;  %s179_s5 = scalar_lea.sflag (!%p173_p3), [#allocation5], %s779_s30 }
  0x21   : > { %s783_s6 = scalar_lea.smem (!%p173_p3), [#allocation2], %s431_s4 }
  0x24   : > { %625 = dma.done.wait (%p734_p8), %s179_s5, 64  }
  0x25   : > { %627 = vsyncadd (%p734_p8), %s179_s5, 4294967232  ;;  %s432_s25 = sshll.u32 %s779_s30, 4  ;;  %s189_s3 = scalar_lea.sflag [#allocation3], %s779_s30 }
  0x26   : > { %s791_s7 = scalar_lea.vmem [#allocation6], %s432_s25 }
  0x27   : > { %629 = dma.done.wait (%p734_p8), %s189_s3, 256  }
  0x28   : > { %631 = vsyncadd (%p734_p8), %s189_s3, 4294967040 }
  0x29   : > { %198 = sfence }
  0x2a   : > { %s433_s8 = sshll.u32 %s779_s30, 6  ;;  %v224_v0 = vlaneseq  ;;  %s434_s15 = sld [smem:[#allocation2 + %s431_s4]]  ;;  %vm257_vm0 = vcmask 130048   ;;  %v663_v3 = vmov 1.0   ;;  %v222_v17 = vld [vmem:[%s791_s7] sm:$0xff]  ;;  %v223_v18 = vld [vmem:[%s791_s7 + $0x8] sm:$0xff] }
  0x2b   : > { %s662_s16 = smov 1   ;;  %s799_s19 = scalar_lea.vmem [#allocation7], %s433_s8 }
  0x2c   : > { %v225_v1 = vand.u32 127, %v224_v0  ;;  %v229_v2 = vshrl.u32 %v224_v0, 7  ;;  %s237_s18 = sld [smem:[%s783_s6 + %s662_s16]]  ;;  %439 = vst.msk [vmem:[%s799_s19 + $0x30] sm:$0xff] %vm257_vm0, %v663_v3  ;;  %s664_s21 = smov 2  }
  0x2d   : > { %s804_s20 = sld [smem:[%s783_s6 + %s664_s21]]  ;;  %440 = vst.msk [vmem:[%s799_s19 + $0x38] sm:$0xff] %vm257_vm0, %v663_v3  ;;  %s665_s27 = smov 128  }
  0x2e   : > { %v226_v4 = vcvt.s32.f32 %v225_v1  ;;  %v230_v5 = vadd.s32 8, %v229_v2  ;;  %v234_v6 = vcvt.s32.f32 %v229_v2  ;;  %s239_s28 = sld [smem:[%s783_s6 + %s665_s27]]  ;;  %s666_s29 = smov 129  }
  0x2f   : > { %s240_s26 = sld [smem:[%s783_s6 + %s666_s29]]  ;;  %s667_s4 = smov 130  }
  0x30   : > { %v245_v7 = vstv %s434_s15  ;;  %v235_v8 = vcvt.s32.f32 %v230_v5  ;;  %s812_s5 = sld [smem:[%s783_s6 + %s667_s4]]  ;;  %s668_s25 = smov 256  }
  0x31   : > { %v246_v9 = vmul.f32 %v245_v7, %v226_v4  ;;  %s242_s3 = sld [smem:[%s783_s6 + %s668_s25]]  ;;  %s669_s8 = smov 257  }
  0x32   : > { %v247_v10 = vstv %s237_s18  ;;  %s243_s16 = sld [smem:[%s783_s6 + %s669_s8]]  ;;  %s670_s15 = smov 258  }
  0x33   : > { %v248_v11 = vmul.f32 %v247_v10, %v234_v6  ;;  %v249_v12 = vmul.f32 %v247_v10, %v235_v8  ;;  %v252_v13 = vstv %s804_s20  ;;  %s818_s21 = sld [smem:[%s783_s6 + %s670_s15]]  ;;  %s447_s6 = sshll.u32 %s650_s12, 6 }
  0x34   : > { %v260_v16 = vstv %s239_s28  ;;  %s307_s20 = scalar_lea.hbm %s879_s2, %s447_s6  ;;  %s308_s12 = sshll.u32 %s799_s19, 4  ;;  %s309_s12 = int_to_ptr.vmem [resolvable:$true] %s308_s12 }
  0x35   : > { %v250_v14 = vadd.f32 %v248_v11, %v246_v9  ;;  %v251_v15 = vadd.f32 %v249_v12, %v246_v9  ;;  %v261_v19 = vmul.f32 %v260_v16, %v226_v4  ;;  %v262_v20 = vstv %s240_s26  ;;  %s310_s28 = sshll.u32 %s307_s20, 4  ;;  %s294_s29 = scalar_lea.sflag [#allocation4], %s779_s30  ;;  %s311_s28 = int_to_ptr.hbm [resolvable:$true] %s310_s28 }
  0x36   : > { %v263_v23 = vmul.f32 %v262_v20, %v234_v6  ;;  %v267_v24 = vstv %s812_s5  ;;  %v264_v25 = vmul.f32 %v262_v20, %v235_v8  ;;  %s586_s26 = sshra.s32 %s311_s28, 4  ;;  %s587_s26 = int_to_ptr.hbm [resolvable:$true] %s586_s26 }
  0x37   : > { %v253_v21 = vadd.f32 %v252_v13, %v250_v14  ;;  %v254_v22 = vadd.f32 %v252_v13, %v251_v15  ;;  %v275_v26 = vstv %s242_s3  ;;  %s588_s4 = scalar_lea.hbm %s587_s26, 64  ;;  %s592_s3 = scalar_lea.hbm %s879_s2, 128 }
  0x38   : > { %v265_v29 = vadd.f32 %v263_v23, %v261_v19  ;;  %v276_v30 = vmul.f32 %v275_v26, %v226_v4  ;;  %v266_v31 = vadd.f32 %v264_v25, %v261_v19  ;;  %v277_v32 = vstv %s243_s16  ;;  %p589_p4 = scmp.ne.s32.totalorder %s587_s26, %s588_s4  ;;  %p593_p7 = scmp.lt.s32.totalorder %s587_s26, %s879_s2 }
  0x39   : > { %v255_v27 = vmul.f32 %v253_v21, %v222_v17  ;;  %v256_v28 = vmul.f32 %v254_v22, %v223_v18  ;;  %v278_v34 = vmul.f32 %v277_v32, %v234_v6  ;;  %v279_v35 = vmul.f32 %v277_v32, %v235_v8  ;;  %p594_p8 = scmp.lt.s32.totalorder %s592_s3, %s588_s4 }
  0x3a   : > { %v268_v33 = vadd.f32 %v267_v24, %v265_v29  ;;  %v269_v36 = vadd.f32 %v267_v24, %v266_v31  ;;  %v282_v37 = vstv %s818_s21  ;;  %p590_p5 = pnand %p589_p4, %p738_p9 }
  0x3b   : > { %258 = vst.msk [vmem:[%s799_s19] sm:$0xff] %vm257_vm0, %v255_v27  ;;  %v280_v39 = vadd.f32 %v278_v34, %v276_v30  ;;  %v281_v40 = vadd.f32 %v279_v35, %v276_v30  ;;  %p595_p10 = por %p594_p8, %p593_p7 }
  0x3c   : > { %259 = vst.msk [vmem:[%s799_s19 + $0x8] sm:$0xff] %vm257_vm0, %v256_v28  ;;  %v270_v38 = vmul.f32 %v268_v33, %v222_v17  ;;  %v271_v41 = vmul.f32 %v269_v36, %v223_v18  ;;  %p591_p6 = pneg %p590_p5 }
  0x3d   : > { %v283_v42 = vadd.f32 %v282_v37, %v280_v39  ;;  %v284_v43 = vadd.f32 %v282_v37, %v281_v40 }
  0x3e   : > { %435 = vst.msk [vmem:[%s799_s19 + $0x10] sm:$0xff] %vm257_vm0, %v270_v38  ;;  %p596_p13 = pnand %p595_p10, %p591_p6 }
  0x3f   : > { %436 = vst.msk [vmem:[%s799_s19 + $0x18] sm:$0xff] %vm257_vm0, %v271_v41  ;;  %v285_v44 = vmul.f32 %v283_v42, %v222_v17  ;;  %v286_v45 = vmul.f32 %v284_v43, %v223_v18 }
  0x41   : > { %437 = vst.msk [vmem:[%s799_s19 + $0x20] sm:$0xff] %vm257_vm0, %v285_v44 }
  0x42   : > { %438 = vst.msk [vmem:[%s799_s19 + $0x28] sm:$0xff] %vm257_vm0, %v286_v45 }
  0x43   : > { %599 = shalt.err (!%p596_p13)
}
  0x44   : > { %s671_s30 = smov 8  }
  0x45   : > { %452 = dma.vmem_to_hbm [thread:$0]  (%p738_p9), %s309_s12, 1024, %s311_s28, %s294_s29, %s665_s27, %s665_s27, %s671_s30  }
  0x46 PF: > { %s325_s19 = sand.u32 1, %s638_s9   ;;  %p462_p0 = pnand %p424_p12, %p745_p11 }
  0x47   : > { %s326_s15 = scalar_lea.sflag [#allocation4], %s325_s19 }
  0x48   : > { %p463_p1 = pneg %p462_p0 }
  0x4a   : > { %633 = dma.done.wait (%p463_p1), %s326_s15, 1024  }
  0x4b   : > { %635 = vsyncadd (%p463_p1), %s326_s15, 4294966272  ;;  %s21_s14 = sadd.s32 1, %s658_s14   ;;  %s885_s9 = smov %s642_s10 }
  0x4c   : > { %p18_p2 = scmp.ge.s32.totalorder %s21_s14, 4   ;;  %s886_s10 = smov %s646_s11 }
  0x4d   : > { %s887_s11 = smov %s743_s23  ;;  %s888_s12 = smov %s654_s13 }
  0x4e   : > { %s889_s13 = smov %s891_s17  ;;  %20 = sbr.rel (!%p18_p2) target bundleno = 8 (0x8), region = 89 }
  0x53   :  { %332 = vsyncpa [#allocation3], 1 }
  0x54   :  { %334 = vsyncpa [#allocation3 + $0x1], 1 }
  0x55   :  { %335 = vsyncpa [#allocation4], 1 }
  0x56   :  { %337 = vsyncpa [#allocation4 + $0x1], 1 }
  0x57   :  { %338 = vsyncpa [#allocation5], 1 }
  0x58   :  { %340 = vsyncpa [#allocation5 + $0x1], 1 }

</bundles_post_ra>
